<compile_context>
chip_gen: v6e
topology: v6e:2x2x1
jax: 0.10.0
libtpu: 0.0.40
codegen_flags: <defaults>
</compile_context>

<pallas_src>
import math

import jax
import jax.numpy as jnp
from jax.experimental import pallas as pl
from jax.experimental.pallas import tpu as pltpu

LN_EPS = 1e-5


# ---------------------------------------------------------------------------
# Kernel 1: fused VariancePredictor (conv3 -> ReLU -> LN -> conv3 -> ReLU -> LN
#           -> Linear(F,1) -> mask fill), one (batch, predictor) slice per step.
# ---------------------------------------------------------------------------
def _conv3_same(x_f32, w_ref, b_ref):
    """kernel-size-3 'same' conv over time: 3 bf16 MXU matmuls + XLU rolls."""
    t = x_f32.shape[0]
    xb = x_f32.astype(jnp.bfloat16)
    y0 = jnp.dot(xb, w_ref[0, 0], preferred_element_type=jnp.float32)
    y1 = jnp.dot(xb, w_ref[0, 1], preferred_element_type=jnp.float32)
    y2 = jnp.dot(xb, w_ref[0, 2], preferred_element_type=jnp.float32)
    rows = jax.lax.broadcasted_iota(jnp.int32, y0.shape, 0)
    prev = jnp.where(rows == 0, 0.0, pltpu.roll(y0, shift=1, axis=0))
    nxt = jnp.where(rows == t - 1, 0.0, pltpu.roll(y2, shift=t - 1, axis=0))
    return prev + y1 + nxt + b_ref[0]


def _layer_norm(h, g_ref, b_ref):
    mu = jnp.mean(h, axis=-1, keepdims=True)
    var = jnp.mean(jnp.square(h - mu), axis=-1, keepdims=True)
    return (h - mu) * jax.lax.rsqrt(var + LN_EPS) * g_ref[0] + b_ref[0]


def _vp_kernel(x_ref, mask_ref,
               w1_ref, b1_ref, g1_ref, be1_ref,
               w2_ref, b2_ref, g2_ref, be2_ref,
               wl_ref, bl_ref,
               out_ref):
    x = x_ref[0]                                                    # (T, C) f32
    h = _layer_norm(jnp.maximum(_conv3_same(x, w1_ref, b1_ref), 0.0), g1_ref, be1_ref)
    h = _layer_norm(jnp.maximum(_conv3_same(h, w2_ref, b2_ref), 0.0), g2_ref, be2_ref)
    y = jnp.dot(h.astype(jnp.bfloat16), wl_ref[0],
                preferred_element_type=jnp.float32) + bl_ref[0]     # (T, 1)
    out_ref[0, 0] = y * (1.0 - mask_ref[0])                         # masked_fill(mask, 0)


def run_variance_predictors(x, mask_f, sp):
    """Run P stacked VariancePredictors on x.  Returns (P, B, T) predictions."""
    b_sz, t_len, c_in = x.shape
    p_cnt = sp["conv1_w"].shape[0]
    f_sz = sp["conv1_w"].shape[-1]
    out = pl.pallas_call(
        _vp_kernel,
        out_shape=jax.ShapeDtypeStruct((p_cnt, b_sz, t_len, 1), jnp.float32),
        grid=(b_sz, p_cnt),
        in_specs=[
            pl.BlockSpec((1, t_len, c_in), lambda b, p: (b, 0, 0)),        # x (reused across p)
            pl.BlockSpec((1, t_len, 1), lambda b, p: (b, 0, 0)),           # mask
            pl.BlockSpec((1, 3, c_in, f_sz), lambda b, p: (p, 0, 0, 0)),   # conv1 w
            pl.BlockSpec((1, 1, f_sz), lambda b, p: (p, 0, 0)),            # conv1 b
            pl.BlockSpec((1, 1, f_sz), lambda b, p: (p, 0, 0)),            # ln1 gamma
            pl.BlockSpec((1, 1, f_sz), lambda b, p: (p, 0, 0)),            # ln1 beta
            pl.BlockSpec((1, 3, f_sz, f_sz), lambda b, p: (p, 0, 0, 0)),   # conv2 w
            pl.BlockSpec((1, 1, f_sz), lambda b, p: (p, 0, 0)),            # conv2 b
            pl.BlockSpec((1, 1, f_sz), lambda b, p: (p, 0, 0)),            # ln2 gamma
            pl.BlockSpec((1, 1, f_sz), lambda b, p: (p, 0, 0)),            # ln2 beta
            pl.BlockSpec((1, f_sz, 1), lambda b, p: (p, 0, 0)),            # linear w
            pl.BlockSpec((1, 1, 1), lambda b, p: (p, 0, 0)),               # linear b
        ],
        out_specs=pl.BlockSpec((1, 1, t_len, 1), lambda b, p: (p, b, 0, 0)),
        compiler_params=pltpu.CompilerParams(
            dimension_semantics=("parallel", "arbitrary"),
            vmem_limit_bytes=32 * 1024 * 1024,
        ),
    )(x, mask_f,
      sp["conv1_w"], sp["conv1_b"], sp["ln1_g"], sp["ln1_b"],
      sp["conv2_w"], sp["conv2_b"], sp["ln2_g"], sp["ln2_b"],
      sp["lin_w"], sp["lin_b"])
    return out[..., 0]


# ---------------------------------------------------------------------------
# Kernel 2: embedding lookup (row gather via scalar prefetch) fused with x + emb.
# ---------------------------------------------------------------------------
def _embed_add_kernel(ids_ref, x_ref, tab_ref, o_ref):
    del ids_ref
    o_ref[...] = x_ref[...] + tab_ref[...]


def pallas_embedding_add(x, table, ids):
    """x: (B, T, C); table: (n_bins, C); ids: (B, T) int32.  Returns x + table[ids]."""
    b_sz, t_len, c_in = x.shape
    rows = b_sz * t_len
    n_bins = table.shape[0]
    out = pl.pallas_call(
        _embed_add_kernel,
        out_shape=jax.ShapeDtypeStruct((rows, 1, c_in), jnp.float32),
        grid_spec=pltpu.PrefetchScalarGridSpec(
            num_scalar_prefetch=1,
            grid=(rows,),
            in_specs=[
                pl.BlockSpec((1, 1, c_in), lambda i, ids: (i, 0, 0)),
                pl.BlockSpec((1, 1, c_in), lambda i, ids: (ids[i], 0, 0)),
            ],
            out_specs=pl.BlockSpec((1, 1, c_in), lambda i, ids: (i, 0, 0)),
        ),
        compiler_params=pltpu.CompilerParams(dimension_semantics=("arbitrary",)),
    )(ids.reshape(rows).astype(jnp.int32),
      x.reshape(rows, 1, c_in),
      table.reshape(n_bins, 1, c_in))
    return out.reshape(b_sz, t_len, c_in)


# ---------------------------------------------------------------------------
# Kernel 3: LengthRegulator expansion as a scalar-prefetch row gather.
# ---------------------------------------------------------------------------
def _gather_rows_kernel(idx_ref, src_ref, o_ref):
    del idx_ref
    o_ref[...] = src_ref[...]


def pallas_gather_rows(src, idx, out_rows):
    """src: (S, C); idx: (out_rows,) int32 in [0, S).  Returns src[idx]."""
    s_rows, c_in = src.shape
    out = pl.pallas_call(
        _gather_rows_kernel,
        out_shape=jax.ShapeDtypeStruct((out_rows, 1, c_in), src.dtype),
        grid_spec=pltpu.PrefetchScalarGridSpec(
            num_scalar_prefetch=1,
            grid=(out_rows,),
            in_specs=[pl.BlockSpec((1, 1, c_in), lambda i, idx: (idx[i], 0, 0))],
            out_specs=pl.BlockSpec((1, 1, c_in), lambda i, idx: (i, 0, 0)),
        ),
        compiler_params=pltpu.CompilerParams(dimension_semantics=("arbitrary",)),
    )(idx.astype(jnp.int32), src.reshape(s_rows, 1, c_in))
    return out.reshape(out_rows, c_in)


# ---------------------------------------------------------------------------
# Plain-JAX glue (index math only; no heavy compute).
# ---------------------------------------------------------------------------
def bucketize(values, boundaries):
    """torch.bucketize(values, boundaries, right=False)."""
    return jnp.sum(values[..., None] > boundaries, axis=-1).astype(jnp.int32)


def get_mask_from_lengths(lengths, max_len):
    ids = jnp.arange(max_len)[None, :]
    return ids >= lengths[:, None]


def length_regulator(x, durations, max_len):
    """Expand x (B, N, C) by integer durations (B, N); pad/truncate to max_len frames."""
    b_sz, n_ph, c_in = x.shape
    cum = jnp.cumsum(durations.astype(jnp.int32), axis=1)               # (B, N)
    mel_len = cum[:, -1]                                                # (B,)
    frames = jnp.arange(max_len, dtype=jnp.int32)[None, :]              # (1, M)
    phon = jnp.sum(cum[:, None, :] <= frames[:, :, None], axis=-1).astype(jnp.int32)
    valid = frames < mel_len[:, None]                                   # (B, M)
    offs = jnp.arange(b_sz, dtype=jnp.int32)[:, None] * n_ph
    flat = jnp.where(valid, phon + offs, b_sz * n_ph)                   # zero-row sentinel
    src = jnp.concatenate([x.reshape(b_sz * n_ph, c_in),
                           jnp.zeros((1, c_in), x.dtype)], axis=0)
    out = pallas_gather_rows(src, flat.reshape(-1), b_sz * max_len)
    return out.reshape(b_sz, max_len, c_in), mel_len


def stack_predictor_params(plist):
    return {k: jnp.stack([p[k] for p in plist], axis=0) for k in plist[0]}


# ---------------------------------------------------------------------------
# VarianceAdaptor forward (phoneme-level pitch / energy features).
# ---------------------------------------------------------------------------
def variance_adaptor_forward(params, x, src_mask, mel_mask=None, max_len=None,
                             pitch_target=None, energy_target=None,
                             duration_target=None,
                             p_control=1.0, e_control=1.0, d_control=1.0):
    # TODO(synk): frame_level pitch/energy feature branch is not implemented.
    mask_f = src_mask.astype(jnp.float32)[..., None]                    # (B, T, 1)

    # duration + pitch predictors share the original x -> one fused call (P = 2)
    dp_stack = stack_predictor_params(
        [params["duration_predictor"], params["pitch_predictor"]])
    preds = run_variance_predictors(x, mask_f, dp_stack)
    log_duration_prediction, pitch_prediction = preds[0], preds[1]

    if pitch_target is not None:
        pitch_ids = bucketize(pitch_target, params["pitch_bins"])
    else:
        pitch_prediction = pitch_prediction * p_control
        pitch_ids = bucketize(pitch_prediction, params["pitch_bins"])
    x = pallas_embedding_add(x, params["pitch_embedding"], pitch_ids)

    # energy predictor runs on x + pitch_embedding (matches the PyTorch ordering)
    e_stack = stack_predictor_params([params["energy_predictor"]])
    energy_prediction = run_variance_predictors(x, mask_f, e_stack)[0]
    if energy_target is not None:
        energy_ids = bucketize(energy_target, params["energy_bins"])
    else:
        energy_prediction = energy_prediction * e_control
        energy_ids = bucketize(energy_prediction, params["energy_bins"])
    x = pallas_embedding_add(x, params["energy_embedding"], energy_ids)

    if duration_target is not None:
        duration_rounded = duration_target
    else:
        duration_rounded = jnp.clip(
            jnp.round(jnp.exp(log_duration_prediction) - 1.0) * d_control, 0.0, None)

    x, mel_len = length_regulator(x, duration_rounded, max_len)
    if duration_target is None:
        # TODO(synk): PyTorch uses max(mel_len) when max_len is None (dynamic shape);
        # here a static max_len must be supplied.
        mel_mask = get_mask_from_lengths(mel_len, max_len)

    return (x, pitch_prediction, energy_prediction, log_duration_prediction,
            duration_rounded, mel_len, mel_mask)


# ---------------------------------------------------------------------------
# Parameter init.
# ---------------------------------------------------------------------------
def init_variance_predictor_params(key, enc_hidden, filter_size):
    ks = jax.random.split(key, 6)
    s1 = 1.0 / math.sqrt(3 * enc_hidden)
    s2 = 1.0 / math.sqrt(3 * filter_size)
    return {
        "conv1_w": (jax.random.normal(ks[0], (3, enc_hidden, filter_size)) * s1
                    ).astype(jnp.bfloat16),
        "conv1_b": jax.random.normal(ks[1], (1, filter_size)) * 0.01,
        "ln1_g": jnp.ones((1, filter_size), jnp.float32),
        "ln1_b": jnp.zeros((1, filter_size), jnp.float32),
        "conv2_w": (jax.random.normal(ks[2], (3, filter_size, filter_size)) * s2
                    ).astype(jnp.bfloat16),
        "conv2_b": jax.random.normal(ks[3], (1, filter_size)) * 0.01,
        "ln2_g": jnp.ones((1, filter_size), jnp.float32),
        "ln2_b": jnp.zeros((1, filter_size), jnp.float32),
        "lin_w": (jax.random.normal(ks[4], (filter_size, 1)) / math.sqrt(filter_size)
                  ).astype(jnp.bfloat16),
        "lin_b": jax.random.normal(ks[5], (1, 1)) * 0.01,
    }


def init_variance_adaptor_params(key, enc_hidden, filter_size, n_bins,
                                 pitch_range=(-1.0, 1.0), energy_range=(-1.0, 1.0)):
    kd, kp, ke, kpe, kee = jax.random.split(key, 5)
    return {
        "duration_predictor": init_variance_predictor_params(kd, enc_hidden, filter_size),
        "pitch_predictor": init_variance_predictor_params(kp, enc_hidden, filter_size),
        "energy_predictor": init_variance_predictor_params(ke, enc_hidden, filter_size),
        "pitch_bins": jnp.linspace(pitch_range[0], pitch_range[1], n_bins - 1),
        "energy_bins": jnp.linspace(energy_range[0], energy_range[1], n_bins - 1),
        "pitch_embedding": jax.random.normal(kpe, (n_bins, enc_hidden), jnp.float32),
        "energy_embedding": jax.random.normal(kee, (n_bins, enc_hidden), jnp.float32),
    }


# ---------------------------------------------------------------------------
# Pure-JAX reference (same bf16 matmul operands) for correctness checking.
# ---------------------------------------------------------------------------
def _ref_conv3(x, w, b):
    b_sz, t_len, c_in = x.shape
    c_out = w.shape[-1]
    xb = x.astype(jnp.bfloat16).reshape(b_sz * t_len, c_in)
    y = [jnp.dot(xb, w[k], preferred_element_type=jnp.float32).reshape(b_sz, t_len, c_out)
         for k in range(3)]
    prev = jnp.concatenate([jnp.zeros_like(y[0][:, :1]), y[0][:, :-1]], axis=1)
    nxt = jnp.concatenate([y[2][:, 1:], jnp.zeros_like(y[2][:, :1])], axis=1)
    return prev + y[1] + nxt + b.reshape(1, 1, c_out)


def _ref_layer_norm(h, g, b):
    mu = jnp.mean(h, axis=-1, keepdims=True)
    var = jnp.mean(jnp.square(h - mu), axis=-1, keepdims=True)
    return (h - mu) * jax.lax.rsqrt(var + LN_EPS) * g.reshape(1, 1, -1) + b.reshape(1, 1, -1)


def ref_variance_predictor(x, mask, p):
    h = _ref_layer_norm(jnp.maximum(_ref_conv3(x, p["conv1_w"], p["conv1_b"]), 0.0),
                        p["ln1_g"], p["ln1_b"])
    h = _ref_layer_norm(jnp.maximum(_ref_conv3(h, p["conv2_w"], p["conv2_b"]), 0.0),
                        p["ln2_g"], p["ln2_b"])
    b_sz, t_len, f_sz = h.shape
    y = jnp.dot(h.astype(jnp.bfloat16).reshape(b_sz * t_len, f_sz), p["lin_w"],
                preferred_element_type=jnp.float32).reshape(b_sz, t_len) + p["lin_b"][0, 0]
    return jnp.where(mask, 0.0, y)


def ref_variance_adaptor_forward(params, x, src_mask, max_len,
                                 pitch_target=None, energy_target=None,
                                 duration_target=None,
                                 p_control=1.0, e_control=1.0, d_control=1.0):
    log_d = ref_variance_predictor(x, src_mask, params["duration_predictor"])
    pitch_pred = ref_variance_predictor(x, src_mask, params["pitch_predictor"])
    if pitch_target is not None:
        pids = bucketize(pitch_target, params["pitch_bins"])
    else:
        pitch_pred = pitch_pred * p_control
        pids = bucketize(pitch_pred, params["pitch_bins"])
    x = x + jnp.take(params["pitch_embedding"], pids, axis=0)
    energy_pred = ref_variance_predictor(x, src_mask, params["energy_predictor"])
    if energy_target is not None:
        eids = bucketize(energy_target, params["energy_bins"])
    else:
        energy_pred = energy_pred * e_control
        eids = bucketize(energy_pred, params["energy_bins"])
    x = x + jnp.take(params["energy_embedding"], eids, axis=0)
    if duration_target is not None:
        dur = duration_target
    else:
        dur = jnp.clip(jnp.round(jnp.exp(log_d) - 1.0) * d_control, 0.0, None)
    b_sz, n_ph, _ = x.shape
    cum = jnp.cumsum(dur.astype(jnp.int32), axis=1)
    mel_len = cum[:, -1]
    frames = jnp.arange(max_len, dtype=jnp.int32)[None, :]
    phon = jnp.sum(cum[:, None, :] <= frames[:, :, None], axis=-1).astype(jnp.int32)
    phon = jnp.minimum(phon, n_ph - 1)
    valid = (frames < mel_len[:, None]).astype(x.dtype)[..., None]
    gathered = jnp.take_along_axis(x, phon[..., None], axis=1) * valid
    return gathered, pitch_pred, energy_pred, log_d, dur, mel_len


# ---------------------------------------------------------------------------
if __name__ == "__main__":
    B, T, C = 2, 8, 32            # batch, phoneme sequence length, encoder hidden
    FILTER, N_BINS, MAX_LEN = 32, 16, 16

    root = jax.random.PRNGKey(0)
    kparam, kx, kp, ke = jax.random.split(root, 4)
    params = init_variance_adaptor_params(kparam, C, FILTER, N_BINS)

    x = jax.random.normal(kx, (B, T, C), jnp.float32)
    lengths = jnp.array([8, 6], jnp.int32)
    src_mask = jnp.arange(T)[None, :] >= lengths[:, None]          # True == padded phoneme
    duration_target = jnp.array([[1, 2, 0, 3, 1, 2, 1, 2],
                                 [2, 1, 3, 0, 2, 2, 0, 0]], jnp.int32)
    pitch_target = jax.random.uniform(kp, (B, T), jnp.float32, -1.0, 1.0)
    energy_target = jax.random.uniform(ke, (B, T), jnp.float32, -1.0, 1.0)

    # ---- run 1: supervised targets (training-style) --------------------------------
    mel, p_pred, e_pred, log_d, dur_r, mel_len, _ = variance_adaptor_forward(
        params, x, src_mask, mel_mask=None, max_len=MAX_LEN,
        pitch_target=pitch_target, energy_target=energy_target,
        duration_target=duration_target)
    jax.block_until_ready(mel)

    r_mel, r_p, r_e, r_logd, _, r_mel_len = ref_variance_adaptor_forward(
        params, x, src_mask, MAX_LEN,
        pitch_target=pitch_target, energy_target=energy_target,
        duration_target=duration_target)

    assert mel.shape == (B, MAX_LEN, C)
    assert bool(jnp.all(jnp.isfinite(mel)))
    assert bool(jnp.allclose(mel, r_mel, atol=1e-5, rtol=1e-5))
    assert bool(jnp.allclose(log_d, r_logd, atol=2e-2, rtol=2e-2))
    assert bool(jnp.allclose(p_pred, r_p, atol=2e-2, rtol=2e-2))
    assert bool(jnp.allclose(e_pred, r_e, atol=2e-2, rtol=2e-2))
    assert bool(jnp.array_equal(mel_len, jnp.sum(duration_target, axis=1)))
    frame_ids = jnp.arange(MAX_LEN)[None, :]
    pad_frames = frame_ids >= mel_len[:, None]
    assert bool(jnp.all(jnp.where(pad_frames[..., None], mel == 0.0, True)))
    assert bool(jnp.all(jnp.where(src_mask, p_pred == 0.0, True)))
    assert bool(jnp.all(jnp.where(src_mask, log_d == 0.0, True)))

    # ---- run 2: inference-style pitch/energy (predict -> bucketize -> embed) -------
    mel2, p_pred2, e_pred2, log_d2, dur_r2, mel_len2, _ = variance_adaptor_forward(
        params, x, src_mask, mel_mask=None, max_len=MAX_LEN,
        pitch_target=None, energy_target=None,
        duration_target=duration_target, p_control=1.0, e_control=1.0)
    jax.block_until_ready(mel2)

    assert mel2.shape == (B, MAX_LEN, C)
    assert bool(jnp.all(jnp.isfinite(mel2)))
    assert bool(jnp.allclose(p_pred2, r_p, atol=2e-2, rtol=2e-2))
    assert bool(jnp.allclose(log_d2, r_logd, atol=2e-2, rtol=2e-2))
    assert bool(jnp.all(jnp.where(src_mask, e_pred2 == 0.0, True)))

    print("KERNEL_OK")
</pallas_src>

<mosaic_0001>
module attributes {stable_mosaic.version = 11 : i64} {
  func.func @_vp_kernel(%arg0: i32, %arg1: i32, %arg2: memref<1x8x32xf32, #tpu.memory_space<vmem>>, %arg3: memref<1x8x1xf32, #tpu.memory_space<vmem>>, %arg4: memref<1x3x32x32xbf16, #tpu.memory_space<vmem>>, %arg5: memref<1x1x32xf32, #tpu.memory_space<vmem>>, %arg6: memref<1x1x32xf32, #tpu.memory_space<vmem>>, %arg7: memref<1x1x32xf32, #tpu.memory_space<vmem>>, %arg8: memref<1x3x32x32xbf16, #tpu.memory_space<vmem>>, %arg9: memref<1x1x32xf32, #tpu.memory_space<vmem>>, %arg10: memref<1x1x32xf32, #tpu.memory_space<vmem>>, %arg11: memref<1x1x32xf32, #tpu.memory_space<vmem>>, %arg12: memref<1x32x1xbf16, #tpu.memory_space<vmem>>, %arg13: memref<1x1x1xf32, #tpu.memory_space<vmem>>, %arg14: memref<1x1x8x1xf32, #tpu.memory_space<vmem>>) attributes {dimension_semantics = [#tpu.dimension_semantics<parallel>, #tpu.dimension_semantics<arbitrary>], iteration_bounds = array<i64: 2, 2>, scalar_prefetch = 0 : i64, scratch_operands = 0 : i64, tpu.core_type = #tpu.core_type<tc>, window_params = [{transform_indices = @transform_0, window_bounds = array<i64: 1, 8, 32>}, {transform_indices = @transform_1, window_bounds = array<i64: 1, 8, 1>}, {transform_indices = @transform_2, window_bounds = array<i64: 1, 3, 32, 32>}, {transform_indices = @transform_3, window_bounds = array<i64: 1, 1, 32>}, {transform_indices = @transform_4, window_bounds = array<i64: 1, 1, 32>}, {transform_indices = @transform_5, window_bounds = array<i64: 1, 1, 32>}, {transform_indices = @transform_6, window_bounds = array<i64: 1, 3, 32, 32>}, {transform_indices = @transform_7, window_bounds = array<i64: 1, 1, 32>}, {transform_indices = @transform_8, window_bounds = array<i64: 1, 1, 32>}, {transform_indices = @transform_9, window_bounds = array<i64: 1, 1, 32>}, {transform_indices = @transform_10, window_bounds = array<i64: 1, 32, 1>}, {transform_indices = @transform_11, window_bounds = array<i64: 1, 1, 1>}, {transform_indices = @transform_12, window_bounds = array<i64: 1, 1, 8, 1>}]} {
    %c0 = arith.constant 0 : index
    %c0_0 = arith.constant 0 : index
    %c0_1 = arith.constant 0 : index
    %0 = vector.load %arg2[%c0, %c0_0, %c0_1] : memref<1x8x32xf32, #tpu.memory_space<vmem>>, vector<1x8x32xf32>
    %1 = vector.shape_cast %0 : vector<1x8x32xf32> to vector<8x32xf32>
    %2 = arith.truncf %1 : vector<8x32xf32> to vector<8x32xbf16>
    %c0_2 = arith.constant 0 : index
    %c0_3 = arith.constant 0 : index
    %c0_4 = arith.constant 0 : index
    %c0_5 = arith.constant 0 : index
    %3 = vector.load %arg4[%c0_2, %c0_3, %c0_4, %c0_5] : memref<1x3x32x32xbf16, #tpu.memory_space<vmem>>, vector<1x1x32x32xbf16>
    %4 = vector.shape_cast %3 : vector<1x1x32x32xbf16> to vector<32x32xbf16>
    %cst = arith.constant dense<0.000000e+00> : vector<8x32xf32>
    %5 = tpu.matmul %2, %4, %cst {dimension_numbers = #tpu.dot_dimension_numbers<[1], [0], [0], [1], [0, 0, 1, 1], [], []>} : vector<8x32xbf16>, vector<32x32xbf16>, vector<8x32xf32> -> vector<8x32xf32>
    %c0_6 = arith.constant 0 : index
    %c1 = arith.constant 1 : index
    %c0_7 = arith.constant 0 : index
    %c0_8 = arith.constant 0 : index
    %6 = vector.load %arg4[%c0_6, %c1, %c0_7, %c0_8] : memref<1x3x32x32xbf16, #tpu.memory_space<vmem>>, vector<1x1x32x32xbf16>
    %7 = vector.shape_cast %6 : vector<1x1x32x32xbf16> to vector<32x32xbf16>
    %cst_9 = arith.constant dense<0.000000e+00> : vector<8x32xf32>
    %8 = tpu.matmul %2, %7, %cst_9 {dimension_numbers = #tpu.dot_dimension_numbers<[1], [0], [0], [1], [0, 0, 1, 1], [], []>} : vector<8x32xbf16>, vector<32x32xbf16>, vector<8x32xf32> -> vector<8x32xf32>
    %c0_10 = arith.constant 0 : index
    %c2 = arith.constant 2 : index
    %c0_11 = arith.constant 0 : index
    %c0_12 = arith.constant 0 : index
    %9 = vector.load %arg4[%c0_10, %c2, %c0_11, %c0_12] : memref<1x3x32x32xbf16, #tpu.memory_space<vmem>>, vector<1x1x32x32xbf16>
    %10 = vector.shape_cast %9 : vector<1x1x32x32xbf16> to vector<32x32xbf16>
    %cst_13 = arith.constant dense<0.000000e+00> : vector<8x32xf32>
    %11 = tpu.matmul %2, %10, %cst_13 {dimension_numbers = #tpu.dot_dimension_numbers<[1], [0], [0], [1], [0, 0, 1, 1], [], []>} : vector<8x32xbf16>, vector<32x32xbf16>, vector<8x32xf32> -> vector<8x32xf32>
    %12 = tpu.iota {dimensions = array<i32: 0>} : vector<8x32xi32>
    %c0_i32 = arith.constant 0 : i32
    %13 = vector.broadcast %c0_i32 : i32 to vector<8x32xi32>
    %14 = arith.cmpi eq, %12, %13 : vector<8x32xi32>
    %c1_i32 = arith.constant 1 : i32
    %15 = tpu.dynamic_rotate %5 by %c1_i32 dim 0 : vector<8x32xf32>, i32 -> vector<8x32xf32>
    %cst_14 = arith.constant 0.000000e+00 : f32
    %16 = vector.broadcast %cst_14 : f32 to vector<8x32xf32>
    %17 = arith.select %14, %16, %15 : vector<8x32xi1>, vector<8x32xf32>
    %c7_i32 = arith.constant 7 : i32
    %18 = vector.broadcast %c7_i32 : i32 to vector<8x32xi32>
    %19 = arith.cmpi eq, %12, %18 : vector<8x32xi32>
    %c7_i32_15 = arith.constant 7 : i32
    %20 = tpu.dynamic_rotate %11 by %c7_i32_15 dim 0 : vector<8x32xf32>, i32 -> vector<8x32xf32>
    %cst_16 = arith.constant 0.000000e+00 : f32
    %21 = vector.broadcast %cst_16 : f32 to vector<8x32xf32>
    %22 = arith.select %19, %21, %20 : vector<8x32xi1>, vector<8x32xf32>
    %23 = arith.addf %17, %8 : vector<8x32xf32>
    %24 = arith.addf %23, %22 : vector<8x32xf32>
    %c0_17 = arith.constant 0 : index
    %c0_18 = arith.constant 0 : index
    %c0_19 = arith.constant 0 : index
    %25 = vector.load %arg5[%c0_17, %c0_18, %c0_19] : memref<1x1x32xf32, #tpu.memory_space<vmem>>, vector<1x1x32xf32>
    %26 = vector.shape_cast %25 : vector<1x1x32xf32> to vector<1x32xf32>
    %27 = vector.broadcast %26 : vector<1x32xf32> to vector<8x32xf32>
    %28 = arith.addf %24, %27 : vector<8x32xf32>
    %cst_20 = arith.constant 0.000000e+00 : f32
    %29 = vector.broadcast %cst_20 : f32 to vector<8x32xf32>
    %30 = arith.maximumf %28, %29 : vector<8x32xf32>
    %cst_21 = arith.constant dense<0.000000e+00> : vector<8xf32>
    %31 = vector.multi_reduction <add>, %30, %cst_21 [1] : vector<8x32xf32> to vector<8xf32>
    %32 = vector.shape_cast %31 : vector<8xf32> to vector<8x1xf32>
    %cst_22 = arith.constant 3.200000e+01 : f32
    %33 = vector.broadcast %cst_22 : f32 to vector<8x1xf32>
    %34 = arith.divf %32, %33 : vector<8x1xf32>
    %35 = vector.broadcast %34 : vector<8x1xf32> to vector<8x32xf32>
    %36 = arith.subf %30, %35 : vector<8x32xf32>
    %37 = arith.mulf %36, %36 : vector<8x32xf32>
    %cst_23 = arith.constant dense<0.000000e+00> : vector<8xf32>
    %38 = vector.multi_reduction <add>, %37, %cst_23 [1] : vector<8x32xf32> to vector<8xf32>
    %39 = vector.shape_cast %38 : vector<8xf32> to vector<8x1xf32>
    %cst_24 = arith.constant 3.200000e+01 : f32
    %40 = vector.broadcast %cst_24 : f32 to vector<8x1xf32>
    %41 = arith.divf %39, %40 : vector<8x1xf32>
    %42 = vector.broadcast %34 : vector<8x1xf32> to vector<8x32xf32>
    %43 = arith.subf %30, %42 : vector<8x32xf32>
    %cst_25 = arith.constant 9.99999974E-6 : f32
    %44 = vector.broadcast %cst_25 : f32 to vector<8x1xf32>
    %45 = arith.addf %41, %44 : vector<8x1xf32>
    %46 = math.rsqrt %45 : vector<8x1xf32>
    %47 = vector.broadcast %46 : vector<8x1xf32> to vector<8x32xf32>
    %48 = arith.mulf %43, %47 : vector<8x32xf32>
    %c0_26 = arith.constant 0 : index
    %c0_27 = arith.constant 0 : index
    %c0_28 = arith.constant 0 : index
    %49 = vector.load %arg6[%c0_26, %c0_27, %c0_28] : memref<1x1x32xf32, #tpu.memory_space<vmem>>, vector<1x1x32xf32>
    %50 = vector.shape_cast %49 : vector<1x1x32xf32> to vector<1x32xf32>
    %51 = vector.broadcast %50 : vector<1x32xf32> to vector<8x32xf32>
    %52 = arith.mulf %48, %51 : vector<8x32xf32>
    %c0_29 = arith.constant 0 : index
    %c0_30 = arith.constant 0 : index
    %c0_31 = arith.constant 0 : index
    %53 = vector.load %arg7[%c0_29, %c0_30, %c0_31] : memref<1x1x32xf32, #tpu.memory_space<vmem>>, vector<1x1x32xf32>
    %54 = vector.shape_cast %53 : vector<1x1x32xf32> to vector<1x32xf32>
    %55 = vector.broadcast %54 : vector<1x32xf32> to vector<8x32xf32>
    %56 = arith.addf %52, %55 : vector<8x32xf32>
    %57 = arith.truncf %56 : vector<8x32xf32> to vector<8x32xbf16>
    %c0_32 = arith.constant 0 : index
    %c0_33 = arith.constant 0 : index
    %c0_34 = arith.constant 0 : index
    %c0_35 = arith.constant 0 : index
    %58 = vector.load %arg8[%c0_32, %c0_33, %c0_34, %c0_35] : memref<1x3x32x32xbf16, #tpu.memory_space<vmem>>, vector<1x1x32x32xbf16>
    %59 = vector.shape_cast %58 : vector<1x1x32x32xbf16> to vector<32x32xbf16>
    %cst_36 = arith.constant dense<0.000000e+00> : vector<8x32xf32>
    %60 = tpu.matmul %57, %59, %cst_36 {dimension_numbers = #tpu.dot_dimension_numbers<[1], [0], [0], [1], [0, 0, 1, 1], [], []>} : vector<8x32xbf16>, vector<32x32xbf16>, vector<8x32xf32> -> vector<8x32xf32>
    %c0_37 = arith.constant 0 : index
    %c1_38 = arith.constant 1 : index
    %c0_39 = arith.constant 0 : index
    %c0_40 = arith.constant 0 : index
    %61 = vector.load %arg8[%c0_37, %c1_38, %c0_39, %c0_40] : memref<1x3x32x32xbf16, #tpu.memory_space<vmem>>, vector<1x1x32x32xbf16>
    %62 = vector.shape_cast %61 : vector<1x1x32x32xbf16> to vector<32x32xbf16>
    %cst_41 = arith.constant dense<0.000000e+00> : vector<8x32xf32>
    %63 = tpu.matmul %57, %62, %cst_41 {dimension_numbers = #tpu.dot_dimension_numbers<[1], [0], [0], [1], [0, 0, 1, 1], [], []>} : vector<8x32xbf16>, vector<32x32xbf16>, vector<8x32xf32> -> vector<8x32xf32>
    %c0_42 = arith.constant 0 : index
    %c2_43 = arith.constant 2 : index
    %c0_44 = arith.constant 0 : index
    %c0_45 = arith.constant 0 : index
    %64 = vector.load %arg8[%c0_42, %c2_43, %c0_44, %c0_45] : memref<1x3x32x32xbf16, #tpu.memory_space<vmem>>, vector<1x1x32x32xbf16>
    %65 = vector.shape_cast %64 : vector<1x1x32x32xbf16> to vector<32x32xbf16>
    %cst_46 = arith.constant dense<0.000000e+00> : vector<8x32xf32>
    %66 = tpu.matmul %57, %65, %cst_46 {dimension_numbers = #tpu.dot_dimension_numbers<[1], [0], [0], [1], [0, 0, 1, 1], [], []>} : vector<8x32xbf16>, vector<32x32xbf16>, vector<8x32xf32> -> vector<8x32xf32>
    %67 = tpu.iota {dimensions = array<i32: 0>} : vector<8x32xi32>
    %c0_i32_47 = arith.constant 0 : i32
    %68 = vector.broadcast %c0_i32_47 : i32 to vector<8x32xi32>
    %69 = arith.cmpi eq, %67, %68 : vector<8x32xi32>
    %c1_i32_48 = arith.constant 1 : i32
    %70 = tpu.dynamic_rotate %60 by %c1_i32_48 dim 0 : vector<8x32xf32>, i32 -> vector<8x32xf32>
    %cst_49 = arith.constant 0.000000e+00 : f32
    %71 = vector.broadcast %cst_49 : f32 to vector<8x32xf32>
    %72 = arith.select %69, %71, %70 : vector<8x32xi1>, vector<8x32xf32>
    %c7_i32_50 = arith.constant 7 : i32
    %73 = vector.broadcast %c7_i32_50 : i32 to vector<8x32xi32>
    %74 = arith.cmpi eq, %67, %73 : vector<8x32xi32>
    %c7_i32_51 = arith.constant 7 : i32
    %75 = tpu.dynamic_rotate %66 by %c7_i32_51 dim 0 : vector<8x32xf32>, i32 -> vector<8x32xf32>
    %cst_52 = arith.constant 0.000000e+00 : f32
    %76 = vector.broadcast %cst_52 : f32 to vector<8x32xf32>
    %77 = arith.select %74, %76, %75 : vector<8x32xi1>, vector<8x32xf32>
    %78 = arith.addf %72, %63 : vector<8x32xf32>
    %79 = arith.addf %78, %77 : vector<8x32xf32>
    %c0_53 = arith.constant 0 : index
    %c0_54 = arith.constant 0 : index
    %c0_55 = arith.constant 0 : index
    %80 = vector.load %arg9[%c0_53, %c0_54, %c0_55] : memref<1x1x32xf32, #tpu.memory_space<vmem>>, vector<1x1x32xf32>
    %81 = vector.shape_cast %80 : vector<1x1x32xf32> to vector<1x32xf32>
    %82 = vector.broadcast %81 : vector<1x32xf32> to vector<8x32xf32>
    %83 = arith.addf %79, %82 : vector<8x32xf32>
    %cst_56 = arith.constant 0.000000e+00 : f32
    %84 = vector.broadcast %cst_56 : f32 to vector<8x32xf32>
    %85 = arith.maximumf %83, %84 : vector<8x32xf32>
    %cst_57 = arith.constant dense<0.000000e+00> : vector<8xf32>
    %86 = vector.multi_reduction <add>, %85, %cst_57 [1] : vector<8x32xf32> to vector<8xf32>
    %87 = vector.shape_cast %86 : vector<8xf32> to vector<8x1xf32>
    %cst_58 = arith.constant 3.200000e+01 : f32
    %88 = vector.broadcast %cst_58 : f32 to vector<8x1xf32>
    %89 = arith.divf %87, %88 : vector<8x1xf32>
    %90 = vector.broadcast %89 : vector<8x1xf32> to vector<8x32xf32>
    %91 = arith.subf %85, %90 : vector<8x32xf32>
    %92 = arith.mulf %91, %91 : vector<8x32xf32>
    %cst_59 = arith.constant dense<0.000000e+00> : vector<8xf32>
    %93 = vector.multi_reduction <add>, %92, %cst_59 [1] : vector<8x32xf32> to vector<8xf32>
    %94 = vector.shape_cast %93 : vector<8xf32> to vector<8x1xf32>
    %cst_60 = arith.constant 3.200000e+01 : f32
    %95 = vector.broadcast %cst_60 : f32 to vector<8x1xf32>
    %96 = arith.divf %94, %95 : vector<8x1xf32>
    %97 = vector.broadcast %89 : vector<8x1xf32> to vector<8x32xf32>
    %98 = arith.subf %85, %97 : vector<8x32xf32>
    %cst_61 = arith.constant 9.99999974E-6 : f32
    %99 = vector.broadcast %cst_61 : f32 to vector<8x1xf32>
    %100 = arith.addf %96, %99 : vector<8x1xf32>
    %101 = math.rsqrt %100 : vector<8x1xf32>
    %102 = vector.broadcast %101 : vector<8x1xf32> to vector<8x32xf32>
    %103 = arith.mulf %98, %102 : vector<8x32xf32>
    %c0_62 = arith.constant 0 : index
    %c0_63 = arith.constant 0 : index
    %c0_64 = arith.constant 0 : index
    %104 = vector.load %arg10[%c0_62, %c0_63, %c0_64] : memref<1x1x32xf32, #tpu.memory_space<vmem>>, vector<1x1x32xf32>
    %105 = vector.shape_cast %104 : vector<1x1x32xf32> to vector<1x32xf32>
    %106 = vector.broadcast %105 : vector<1x32xf32> to vector<8x32xf32>
    %107 = arith.mulf %103, %106 : vector<8x32xf32>
    %c0_65 = arith.constant 0 : index
    %c0_66 = arith.constant 0 : index
    %c0_67 = arith.constant 0 : index
    %108 = vector.load %arg11[%c0_65, %c0_66, %c0_67] : memref<1x1x32xf32, #tpu.memory_space<vmem>>, vector<1x1x32xf32>
    %109 = vector.shape_cast %108 : vector<1x1x32xf32> to vector<1x32xf32>
    %110 = vector.broadcast %109 : vector<1x32xf32> to vector<8x32xf32>
    %111 = arith.addf %107, %110 : vector<8x32xf32>
    %112 = arith.truncf %111 : vector<8x32xf32> to vector<8x32xbf16>
    %c0_68 = arith.constant 0 : index
    %c0_69 = arith.constant 0 : index
    %c0_70 = arith.constant 0 : index
    %113 = vector.load %arg12[%c0_68, %c0_69, %c0_70] : memref<1x32x1xbf16, #tpu.memory_space<vmem>>, vector<1x32x1xbf16>
    %114 = vector.shape_cast %113 : vector<1x32x1xbf16> to vector<32x1xbf16>
    %cst_71 = arith.constant dense<0.000000e+00> : vector<8x1xf32>
    %115 = tpu.matmul %112, %114, %cst_71 {dimension_numbers = #tpu.dot_dimension_numbers<[1], [0], [0], [1], [0, 0, 1, 1], [], []>} : vector<8x32xbf16>, vector<32x1xbf16>, vector<8x1xf32> -> vector<8x1xf32>
    %c0_72 = arith.constant 0 : index
    %c0_73 = arith.constant 0 : index
    %c0_74 = arith.constant 0 : index
    %116 = vector.load %arg13[%c0_72, %c0_73, %c0_74] : memref<1x1x1xf32, #tpu.memory_space<vmem>>, vector<1x1x1xf32>
    %117 = vector.shape_cast %116 : vector<1x1x1xf32> to vector<1x1xf32>
    %118 = vector.broadcast %117 : vector<1x1xf32> to vector<8x1xf32>
    %119 = arith.addf %115, %118 : vector<8x1xf32>
    %c0_75 = arith.constant 0 : index
    %c0_76 = arith.constant 0 : index
    %c0_77 = arith.constant 0 : index
    %120 = vector.load %arg3[%c0_75, %c0_76, %c0_77] : memref<1x8x1xf32, #tpu.memory_space<vmem>>, vector<1x8x1xf32>
    %121 = vector.shape_cast %120 : vector<1x8x1xf32> to vector<8x1xf32>
    %cst_78 = arith.constant 1.000000e+00 : f32
    %122 = vector.broadcast %cst_78 : f32 to vector<8x1xf32>
    %123 = arith.subf %122, %121 : vector<8x1xf32>
    %124 = arith.mulf %119, %123 : vector<8x1xf32>
    %c0_79 = arith.constant 0 : index
    %c0_80 = arith.constant 0 : index
    %c0_81 = arith.constant 0 : index
    %c0_82 = arith.constant 0 : index
    %125 = vector.load %arg14[%c0_79, %c0_80, %c0_81, %c0_82] : memref<1x1x8x1xf32, #tpu.memory_space<vmem>>, vector<1x1x8x1xf32>
    %126 = vector.shape_cast %125 : vector<1x1x8x1xf32> to vector<8x1xf32>
    %127 = vector.shape_cast %124 : vector<8x1xf32> to vector<1x1x8x1xf32>
    tpu.vector_store %arg14[%c0_79, %c0_80, %c0_81, %c0_82], %127 {strides = array<i32>} : memref<1x1x8x1xf32, #tpu.memory_space<vmem>>, vector<1x1x8x1xf32>,
    return
  }
  func.func @transform_0(%arg0: i32, %arg1: i32) -> (i32, i32, i32) {
    %c0_i32 = arith.constant 0 : i32
    %c0_i32_0 = arith.constant 0 : i32
    %c0_i32_1 = arith.constant 0 : i32
    return %arg0, %c0_i32, %c0_i32_0 : i32, i32, i32
  }
  func.func @transform_1(%arg0: i32, %arg1: i32) -> (i32, i32, i32) {
    %c0_i32 = arith.constant 0 : i32
    %c0_i32_0 = arith.constant 0 : i32
    %c0_i32_1 = arith.constant 0 : i32
    return %arg0, %c0_i32, %c0_i32_0 : i32, i32, i32
  }
  func.func @transform_2(%arg0: i32, %arg1: i32) -> (i32, i32, i32, i32) {
    %c0_i32 = arith.constant 0 : i32
    %c0_i32_0 = arith.constant 0 : i32
    %c0_i32_1 = arith.constant 0 : i32
    %c0_i32_2 = arith.constant 0 : i32
    return %arg1, %c0_i32, %c0_i32_0, %c0_i32_1 : i32, i32, i32, i32
  }
  func.func @transform_3(%arg0: i32, %arg1: i32) -> (i32, i32, i32) {
    %c0_i32 = arith.constant 0 : i32
    %c0_i32_0 = arith.constant 0 : i32
    %c0_i32_1 = arith.constant 0 : i32
    return %arg1, %c0_i32, %c0_i32_0 : i32, i32, i32
  }
  func.func @transform_4(%arg0: i32, %arg1: i32) -> (i32, i32, i32) {
    %c0_i32 = arith.constant 0 : i32
    %c0_i32_0 = arith.constant 0 : i32
    %c0_i32_1 = arith.constant 0 : i32
    return %arg1, %c0_i32, %c0_i32_0 : i32, i32, i32
  }
  func.func @transform_5(%arg0: i32, %arg1: i32) -> (i32, i32, i32) {
    %c0_i32 = arith.constant 0 : i32
    %c0_i32_0 = arith.constant 0 : i32
    %c0_i32_1 = arith.constant 0 : i32
    return %arg1, %c0_i32, %c0_i32_0 : i32, i32, i32
  }
  func.func @transform_6(%arg0: i32, %arg1: i32) -> (i32, i32, i32, i32) {
    %c0_i32 = arith.constant 0 : i32
    %c0_i32_0 = arith.constant 0 : i32
    %c0_i32_1 = arith.constant 0 : i32
    %c0_i32_2 = arith.constant 0 : i32
    return %arg1, %c0_i32, %c0_i32_0, %c0_i32_1 : i32, i32, i32, i32
  }
  func.func @transform_7(%arg0: i32, %arg1: i32) -> (i32, i32, i32) {
    %c0_i32 = arith.constant 0 : i32
    %c0_i32_0 = arith.constant 0 : i32
    %c0_i32_1 = arith.constant 0 : i32
    return %arg1, %c0_i32, %c0_i32_0 : i32, i32, i32
  }
  func.func @transform_8(%arg0: i32, %arg1: i32) -> (i32, i32, i32) {
    %c0_i32 = arith.constant 0 : i32
    %c0_i32_0 = arith.constant 0 : i32
    %c0_i32_1 = arith.constant 0 : i32
    return %arg1, %c0_i32, %c0_i32_0 : i32, i32, i32
  }
  func.func @transform_9(%arg0: i32, %arg1: i32) -> (i32, i32, i32) {
    %c0_i32 = arith.constant 0 : i32
    %c0_i32_0 = arith.constant 0 : i32
    %c0_i32_1 = arith.constant 0 : i32
    return %arg1, %c0_i32, %c0_i32_0 : i32, i32, i32
  }
  func.func @transform_10(%arg0: i32, %arg1: i32) -> (i32, i32, i32) {
    %c0_i32 = arith.constant 0 : i32
    %c0_i32_0 = arith.constant 0 : i32
    %c0_i32_1 = arith.constant 0 : i32
    return %arg1, %c0_i32, %c0_i32_0 : i32, i32, i32
  }
  func.func @transform_11(%arg0: i32, %arg1: i32) -> (i32, i32, i32) {
    %c0_i32 = arith.constant 0 : i32
    %c0_i32_0 = arith.constant 0 : i32
    %c0_i32_1 = arith.constant 0 : i32
    return %arg1, %c0_i32, %c0_i32_0 : i32, i32, i32
  }
  func.func @transform_12(%arg0: i32, %arg1: i32) -> (i32, i32, i32, i32) {
    %c0_i32 = arith.constant 0 : i32
    %c0_i32_0 = arith.constant 0 : i32
    %c0_i32_1 = arith.constant 0 : i32
    return %arg1, %arg0, %c0_i32, %c0_i32_0 : i32, i32, i32, i32
  }
}

</mosaic_0001>

<bundles_post_ra>
// kernel: tpu_custom_call.1
= control target key start
LH: loop header
LB: loop body
LE: loop exit
PB: predicated region body
PF: predicated region fallthrough
CT: control target
= control target key end

     0   :  { %s2073_s0 = inlined_call_operand.vmem [shape: f32[2,8,32], index: 0, kind: input, shape index: {}]   ;;  %s2074_s1 = inlined_call_operand.vmem [shape: f32[2,8,1], index: 1, kind: input, shape index: {}]   ;;  %s2075_s2 = inlined_call_operand.hbm [shape: bf16[2,3,32,32], index: 2, kind: input, shape index: {}]   ;;  %s2076_s3 = inlined_call_operand.vmem [shape: f32[2,1,32], index: 3, kind: input, shape index: {}]   ;;  %s2077_s4 = inlined_call_operand.vmem [shape: f32[2,1,32], index: 4, kind: input, shape index: {}]   ;;  %s2078_s5 = inlined_call_operand.vmem [shape: f32[2,1,32], index: 5, kind: input, shape index: {}]   ;;  %s2079_s6 = inlined_call_operand.hbm [shape: bf16[2,3,32,32], index: 6, kind: input, shape index: {}]   ;;  %s2080_s7 = inlined_call_operand.vmem [shape: f32[2,1,32], index: 7, kind: input, shape index: {}]   ;;  %s2081_s8 = inlined_call_operand.vmem [shape: f32[2,1,32], index: 8, kind: input, shape index: {}]   ;;  %s2082_s9 = inlined_call_operand.vmem [shape: f32[2,1,32], index: 9, kind: input, shape index: {}]   ;;  %s2083_s10 = inlined_call_operand.vmem [shape: bf16[2,32,1], index: 10, kind: input, shape index: {}]   ;;  %s2084_s11 = inlined_call_operand.vmem [shape: f32[2,1,1], index: 11, kind: input, shape index: {}]   ;;  %s2085_s12 = inlined_call_operand.vmem [shape: f32[2,2,8,1], index: 12, kind: output, shape index: {}]  }
   0x1   :  { %2090 = sst [smem:[#allocation14_spill]] %s2074_s1 }
   0x2   :  { %2091 = sst [smem:[#allocation15_spill]] %s2075_s2 }
   0x3   :  { %2092 = sst [smem:[#allocation16_spill]] %s2084_s11 }
   0x4   :  { %2093 = sst [smem:[#allocation17_spill]] %s2085_s12 }
   0x5   :  { %17 = vsyncpa [#allocation3], 0 }
   0x6   :  { %19 = vsyncpa [#allocation3 + $0x1], 0 }
   0x7   :  { %20 = vsyncpa [#allocation5], 0 }
   0x8   :  { %22 = vsyncpa [#allocation5 + $0x1], 0  ;;  %s1815_s21 = smov 0   ;;  %s1817_s22 = smov 0  }
   0x9   :  { %s1819_s23 = smov 0   ;;  %s1821_s24 = smov 0  }
   0xa   :  { %s1823_s25 = smov 0   ;;  %s1825_s26 = smov 0  }
   0xb   :  { %s1827_s27 = smov 0   ;;  %s1829_s28 = smov 0  }
   0xc LB: > { %2094 = sst [smem:[#allocation8_spill]] %s1722_s23  ;;  %s1376_s29 = sadd.s32 4294967295, %s1742_s28   ;;  %s1742_s28 = sphi %s1829_s28, %s28_s28   ;;  %s1738_s27 = sphi %s1827_s27, %s2112_s27   ;;  %s1734_s26 = sphi %s1825_s26, %s2111_s26   ;;  %s1730_s25 = sphi %s1823_s25, %s2116_s25   ;;  %s1726_s24 = sphi %s1821_s24, %s2115_s24   ;;  %s1722_s23 = sphi %s1819_s23, %s2108_s23   ;;  %s1718_s22 = sphi %s1817_s22, %s2114_s22   ;;  %s1714_s21 = sphi %s1815_s21, %s2113_s21  }
   0xd   : > { %2095 = sst [smem:[#allocation9_spill]] %s1734_s26  ;;  %s37_s30 = sadd.s32 1, %s1734_s26 }
   0xe   : > { %2096 = sst [smem:[#allocation10_spill]] %s1738_s27  ;;  %p38_p0 = scmp.ge.s32.totalorder %s37_s30, 2 }
   0xf   : > { %s40_s13 = sadd.s32 1, %s1738_s27  ;;  %s99_s14 = sadd.s32 1, %s1722_s23 }
  0x10   : > { %p106_p1 = scmp.ne.s32.totalorder %s1722_s23, %s1718_s22  ;;  %s2118_s30 = smov (%p38_p0, %s37_s30), 0 }
  0x11   : > { %2097 = sst [smem:[#allocation11_spill]] %s2118_s30  ;;  %s2120_s13 = smov (!%p38_p0, %s40_s13), %s1738_s27 }
  0x12   : > { %s96_s15 = ssub.s32 %s1734_s26, %s2118_s30  ;;  %p107_p2 = scmp.eq.s32.totalorder %s1742_s28, 0 }
  0x13   : > { %p42_p3 = scmp.ge.s32.totalorder %s2120_s13, 2  ;;  %p97_p4 = scmp.eq.s32.totalorder %s96_s15, 0 }
  0x14   : > { %p108_p5 = por %p107_p2, %p106_p1  ;;  %p112_p6 = scmp.ne.s32.totalorder %s1718_s22, %s1714_s21 }
  0x15   : > { %s2122_s13 = smov (%p42_p3, %s2120_s13), 0  ;;  %p113_p7 = scmp.eq.s32.totalorder %s1376_s29, 0 }
  0x16   : > { %2098 = sst [smem:[#allocation12_spill]] %s2122_s13  ;;  %p1529_p8 = scmp.lt.s32.totalorder %s1742_s28, 4 }
  0x17   : > { %s1869_s16 = scalar_select %p97_p4, %s1722_s23, %s99_s14  }
  0x18   : > { %s1873_s17 = sand.u32 1, %s1722_s23   ;;  %p1875_p9 = por %p113_p7, %p112_p6 }
  0x19   : > { %2099 = sst [smem:[#allocation13_spill]] %s1869_s16  ;;  %s1513_s19 = smul.u32 48, %s1873_s17 }
  0x1a   : > { %p1880_p10 = pnand %p1529_p8, %p108_p5  ;;  %s1514_s21 = smul.u32 768, %s1734_s26 }
  0x1b   : > { %s2102_s2 = sld [smem:[#allocation15_spill]]  ;;  %s416_s13 = scalar_lea.vmem [#allocation2], %s1513_s19 }
  0x1c   : > { %s423_s30 = sshll.u32 %s416_s13, 4  ;;  %s413_s27 = scalar_lea.sflag [#allocation3], %s1873_s17  ;;  %s424_s30 = int_to_ptr.vmem [resolvable:$true] %s423_s30 }
  0x1d   : > { %p1618_p11 = pneg %p1880_p10  ;;  %s1629_s16 = scalar_lea.vmem %s424_s30, 768 }
  0x1e   : > { %p1630_p12 = scmp.ne.s32.totalorder %s424_s30, %s1629_s16  ;;  %s1744_s23 = smov [#allocation2]  }
  0x1f   : > { %s1634_s12 = sshll.u32 %s1744_s23, 4  ;;  %s1635_s12 = int_to_ptr.vmem [resolvable:$false] %s1634_s12 }
  0x20   : > { %p1632_p13 = pnand %p1630_p12, %p1618_p11  ;;  %s1636_s26 = scalar_lea.vmem %s1635_s12, 1536 }
  0x21   : > { %s422_s15 = scalar_lea.hbm %s2102_s2, %s1514_s21  ;;  %p1637_p1 = scmp.lt.s32.totalorder %s424_s30, %s1635_s12 }
  0x22   : > { %p1633_p0 = pneg %p1632_p13  ;;  %p1638_p2 = scmp.lt.s32.totalorder %s1636_s26, %s1629_s16 }
  0x24   : > { %p1639_p3 = por %p1638_p2, %p1637_p1 }
  0x26   : > { %p1640_p4 = pnand %p1639_p3, %p1633_p0 }
  0x28   : > { %1643 = shalt.err (!%p1640_p4)
}
  0x29   : > { %s1745_s13 = smov 64   ;;  %s1746_s14 = smov 4  }
  0x2a   : > { %1525 = dma.hbm_to_vmem [thread:$0]  (!%p1880_p10), %s422_s15, 768, %s424_s30, %s413_s27, %s1745_s13, %s1745_s13, %s1746_s14  }
  0x2b   : > { %p1382_p5 = scmp.ge.s32.totalorder %s1742_s28, 1  ;;  %p502_p6 = scmp.lt.s32.totalorder %s1742_s28, 5 }
  0x2c   : > { %s461_s16 = scalar_lea.hbm %s2079_s6, %s1514_s21  ;;  %s455_s29 = scalar_lea.vmem [#allocation4], %s1513_s19 }
  0x2d   : > { %p1900_p7 = pnand %p1382_p5, %p502_p6  ;;  %s462_s2 = sshll.u32 %s455_s29, 4  ;;  %s463_s2 = int_to_ptr.vmem [resolvable:$true] %s462_s2 }
  0x2e   : > { %s452_s11 = scalar_lea.sflag [#allocation5], %s1873_s17  ;;  %s1657_s1 = scalar_lea.vmem %s463_s2, 768 }
  0x2f   : > { %p1658_p8 = scmp.ne.s32.totalorder %s463_s2, %s1657_s1  ;;  %s1747_s27 = smov [#allocation4]  }
  0x30   : > { %s1662_s30 = sshll.u32 %s1747_s27, 4  ;;  %s1663_s30 = int_to_ptr.vmem [resolvable:$false] %s1662_s30 }
  0x31   : > { %p1660_p12 = pnand %p1658_p8, %p1618_p11  ;;  %s1664_s15 = scalar_lea.vmem %s1663_s30, 1536 }
  0x32   : > { %p1665_p0 = scmp.lt.s32.totalorder %s463_s2, %s1663_s30  ;;  %p1666_p1 = scmp.lt.s32.totalorder %s1664_s15, %s1657_s1 }
  0x33   : > { %p1661_p13 = pneg %p1660_p12 }
  0x34   : > { %p1667_p2 = por %p1666_p1, %p1665_p0 }
  0x36   : > { %p1668_p3 = pnand %p1667_p2, %p1661_p13 }
  0x38   : > { %1671 = shalt.err (!%p1668_p3)
}
  0x39   : > { %1528 = dma.hbm_to_vmem [thread:$0]  (!%p1880_p10), %s461_s16, 768, %s463_s2, %s452_s11, %s1745_s13, %s1745_s13, %s1746_s14  }
  0x3a   : > { %506 = sbr.rel (%p1900_p7) target bundleno = 1315 (0x523), region = 68  ;;  %s508_s17 = sand.u32 (!%p1900_p7), 1, %s1718_s22  }
  0x3b   : > { %s1517_s19 = smul.u32 (!%p1900_p7), 48, %s508_s17  ;;  %s509_s21 = scalar_lea.sflag (!%p1900_p7), [#allocation3], %s508_s17 }
  0x3d   : > { %s1918_s12 = scalar_lea.vmem (!%p1900_p7), [#allocation2], %s1517_s19 }
  0x3f   : > { %1705 = dma.done.wait (%p1875_p9), %s509_s21, 768  }
  0x40   : > { %1707 = vsyncadd (%p1875_p9), %s509_s21, 4294966528  ;;  %s518_s1 = scalar_lea.sflag [#allocation5], %s508_s17  ;;  %s1924_s26 = scalar_lea.vmem [#allocation4], %s1517_s19 }
  0x41   : > { %1709 = dma.done.wait (%p1875_p9), %s518_s1, 768  }
  0x42   : > { %1711 = vsyncadd (%p1875_p9), %s518_s1, 4294966528  ;;  %p604_p10 = scmp.lt.s32.totalorder %s1730_s25, 1  ;;  %v1748_v0 = vmov 0.0   ;;  %vm1749_vm0 = vmmov 0   ;;  %v1598_v1 = vld [vmem:[%s1918_s12 + $0x8] sm:$0xff]   ;;  %v1599_v2 = vld [vmem:[%s1918_s12] sm:$0xff]   ;;  %v823_v9 = vlaneseq }
  0x43   : > { %1457 = vmatprep.subr.bf16.mxu0 %v1748_v0  ;;  %1465 = vmatprep.subr.bf16.mxu1 %v1748_v0  ;;  %v1600_v3 = vld [vmem:[%s1918_s12 + $0x18] sm:$0xff]   ;;  %v1601_v5 = vld [vmem:[%s1918_s12 + $0x10] sm:$0xff]   ;;  %vm665_vm1 = vcmask 261120   ;;  %v1602_v7 = vld [vmem:[%s1918_s12 + $0x28] sm:$0xff]   ;;  %p612_p9 = scmp.lt.s32.totalorder %s1726_s24, 1  ;;  %vm1160_vm4 = vcmask 7168  }
  0x44   : > { %1461 = vmatprep.mubr.msk.bf16.mxu0 %vm1749_vm0, %v1748_v0  ;;  %s2124_s25 = smov (!%p604_p10, %s1730_s25), 1  ;;  %1469 = vmatprep.mubr.msk.bf16.mxu1 %vm1749_vm0, %v1748_v0  ;;  %v1603_v8 = vld [vmem:[%s1918_s12 + $0x20] sm:$0xff]   ;;  %v1968_v11 = vshrl.u32 %v823_v9, 7  ;;  %v1604_v38 = vld [vmem:[%s1924_s26 + $0x8] sm:$0xff]   ;;  %v1605_v39 = vld [vmem:[%s1924_s26 + $0x18] sm:$0xff]  }
  0x45   : > { %s1383_s2 = sshll.u32 %s2124_s25, 3  ;;  %1458 = vmatpush3.bf16.msra.mxu0 %v1598_v1  ;;  %1466 = vmatpush3.bf16.msra.mxu1 %v1600_v3  ;;  %s2126_s24 = smov (!%p612_p9, %s1726_s24), 1  ;;  %v1606_v40 = vld [vmem:[%s1924_s26] sm:$0xff]   ;;  %v1607_v41 = vld [vmem:[%s1924_s26 + $0x10] sm:$0xff]   ;;  %v1608_v51 = vld [vmem:[%s1924_s26 + $0x28] sm:$0xff]  }
  0x46   : > { %s607_s20 = scalar_lea.vmem %s2073_s0, %s1383_s2  ;;  %1459 = vmatprep.subr.bf16.mxu0 %v1748_v0  ;;  %1467 = vmatprep.subr.bf16.mxu1 %v1748_v0  ;;  %vm825_vm2 = vcmp.eq.s32.totalorder %v1968_v11, 0  ;;  %vm828_vm3 = vcmp.eq.s32.totalorder %v1968_v11, 7  ;;  %s614_s23 = scalar_lea.vmem %s2076_s3, %s2126_s24  ;;  %v1609_v53 = vld [vmem:[%s1924_s26 + $0x20] sm:$0xff]  }
  0x47   : > { %v647_v4 = vld [vmem:[%s607_s20] sm:$0xff]  ;;  %s617_s27 = scalar_lea.vmem %s2077_s4, %s2126_s24  ;;  %s620_s17 = scalar_lea.vmem %s2078_s5, %s2126_s24 }
  0x48   : > { %v648_v6 = vpack.c.bf16 %v647_v4, %v647_v4  ;;  %v1406_v26 = vld [vmem:[%s614_s23] ss:$0 sm:$0xff]  ;;  %s623_s12 = scalar_lea.vmem %s2080_s7, %s2126_s24  ;;  %s1435_s1 = sshll.u32 %s2126_s24, 4 }
  0x49   : > { %1460 = vmatpush3.bf16.msra.mxu0 %v1599_v2  ;;  %1468 = vmatpush3.bf16.msra.mxu1 %v1601_v5  ;;  %v1407_v46 = vld [vmem:[%s617_s27] ss:$0 sm:$0xff]  ;;  %s634_s18 = scalar_lea.vmem %s2083_s10, %s1435_s1  ;;  %s626_s14 = scalar_lea.vmem %s2081_s8, %s2126_s24 }
  0x4a   : > { %1473 = vmatprep.subr.bf16.mxu0 %v1748_v0  ;;  %1481 = vmatprep.subr.bf16.mxu1 %v1748_v0  ;;  %v1408_v48 = vld [vmem:[%s620_s17] ss:$0 sm:$0xff]  ;;  %v1610_v11 = vld [vmem:[%s634_s18 + $0x8] sm:$0xff]   ;;  %s629_s29 = scalar_lea.vmem %s2082_s9, %s2126_s24  ;;  %s1387_s27 = sshll.u32 %s2126_s24, 1 }
  0x4b   : > { %s2104_s17 = sld [smem:[#allocation14_spill]]  ;;  %s643_s11 = sadd.s32 %s1387_s27, %s2124_s25 }
  0x4c   : > { %1462 = vmatmul.mubr.msk.bf16.vlgmr.msra.gmra.mxu0 %vm665_vm1, %v648_v6  ;;  %1470 = vmatmul.mubr.msk.bf16.vlgmr.msra.gmra.mxu1 %vm665_vm1, %v648_v6  ;;  %s2105_s1 = sld [smem:[#allocation16_spill]] }
  0x4d   : > { %1474 = vmatpush3.bf16.msra.mxu0 %v1602_v7  ;;  %1477 = vmatprep.mubr.msk.bf16.mxu0 %vm1749_vm0, %v1748_v0 }
  0x4e   : > { %1475 = vmatprep.subr.bf16.mxu0 %v1748_v0  ;;  %1485 = vmatprep.mubr.msk.bf16.mxu1 %vm1749_vm0, %v1748_v0 }
  0x4f   : > { %1482 = vmatpush3.bf16.msra.mxu1 %v1604_v38 }
  0x50   : > { %1483 = vmatprep.subr.bf16.mxu1 %v1748_v0 }
  0x51   : > { %1476 = vmatpush3.bf16.msra.mxu0 %v1603_v8  ;;  %s611_s19 = scalar_lea.vmem %s2104_s17, %s1383_s2 }
  0x52   : > { %1489 = vmatprep.subr.bf16.mxu0 %v1748_v0  ;;  %s637_s26 = scalar_lea.vmem %s2105_s1, %s2126_s24 }
  0x53   : > { %1484 = vmatpush3.bf16.msra.mxu1 %v1606_v40 }
  0x54   : > { %1478 = vmatmul.mubr.msk.bf16.vlgmr.msra.gmra.mxu0 %vm665_vm1, %v648_v6  ;;  %1497 = vmatprep.subr.bf16.mxu1 %v1748_v0  ;;  %v1426_v6 = vld [vmem:[%s623_s12] ss:$0 sm:$0xff] }
  0x55   : > { %1493 = vmatprep.mubr.msk.bf16.mxu0 %vm1749_vm0, %v1748_v0  ;;  %1490 = vmatpush3.bf16.msra.mxu0 %v1605_v39 }
  0x56   : > { %1491 = vmatprep.subr.bf16.mxu0 %v1748_v0 }
  0x59   : > { %1492 = vmatpush3.bf16.msra.mxu0 %v1607_v41 }
  0x5a   : > { %1505 = vmatprep.subr.bf16.mxu0 %v1748_v0 }
 0x10c   : > { %v703_v10 = vpop.f32.mrf.mxu0  ;;  %v760_v13 = vpop.f32.mrf.mxu1 }
 0x10d   : > { %v826_v14 = vrot.slane %v703_v10, 7 }
 0x10e   : > { %v1463_v12 = vpop.f32.mrf.mxu0  ;;  %v1471_v16 = vpop.f32.mrf.mxu1 }
 0x10f   : > { %v827_v19 = vsel %vm825_vm2, 0.0, %v826_v14 }
 0x110   : > { %v706_v15 = vpop.f32.mrf.mxu0  ;;  %v763_v18 = vpop.f32.mrf.mxu1  ;;  %v831_v23 = vadd.f32 %v827_v19, %v760_v13  ;;  %v1611_v19 = vld [vmem:[%s634_s18] sm:$0xff]   ;;  %s1388_s18 = sshll.u32 %s643_s11, 3 }
 0x112   : > { %v1464_v17 = vpop.f32.mrf.mxu0  ;;  %v1472_v21 = vpop.f32.mrf.mxu1 }
 0x114   : > { %v817_v20 = vpop.f32.mrf.mxu0 }
 0x115   : > { %v829_v22 = vrot.slane %v817_v20, 1 }
 0x116   : > { %v1479_v24 = vpop.f32.mrf.mxu0 }
 0x117   : > { %v830_v25 = vsel %vm828_vm3, 0.0, %v829_v22  ;;  %v1427_v24 = vld [vmem:[%s626_s14] ss:$0 sm:$0xff]  ;;  %s2106_s14 = sld [smem:[#allocation17_spill]] }
 0x118   : > { %v832_v27 = vadd.f32 %v831_v23, %v830_v25  ;;  %v820_v28 = vpop.f32.mrf.mxu0  ;;  %v1428_v25 = vld [vmem:[%s629_s29] ss:$0 sm:$0xff] }
 0x11a   : > { %v1480_v29 = vpop.f32.mrf.mxu0  ;;  %v840_v30 = vadd.f32 %v1406_v26, %v832_v27 }
 0x11b   : > { %v1157_v29 = vld [vmem:[%s611_s19] sm:$0xff] }
 0x11c   : > { %v841_v31 = vmax.f32 %v840_v30, 0.0  ;;  %v1429_v30 = vld [vmem:[%s637_s26] ss:$0 sm:$0xff] }
 0x11d   : > { %s645_s23 = scalar_lea.vmem %s2106_s14, %s1388_s18 }
 0x11e   : > { %v842_v32 = vsel %vm665_vm1, %v841_v31, 0.0 }
 0x11f   : > { %843 = vadd.xlane.f32.xlu0 %v842_v32 }
 0x1a8   : > { %v844_v33 = vpop.xlane.xlu0 %843 }
 0x1a9   : > { %v846_v34 = vmul.f32 0.03125, %v844_v33 }
 0x1ab   : > { %v847_v35 = vsub.f32 %v841_v31, %v846_v34  ;;  %v1158_v31 = vsub.f32 1.0, %v1157_v29 }
 0x1ad   : > { %v848_v36 = vmul.f32 %v847_v35, %v847_v35 }
 0x1af   : > { %v849_v37 = vsel %vm665_vm1, %v848_v36, 0.0 }
 0x1b0   : > { %850 = vadd.xlane.f32.xlu0 %v849_v37 }
 0x239   : > { %v851_v42 = vpop.xlane.xlu0 %850 }
 0x23a   : > { %v852_v43 = vmul.f32 0.03125, %v851_v42 }
 0x23c   : > { %v853_v44 = vadd.f32 1e-05, %v852_v43 }
 0x23e   : > { %1612 = vrsqrt.f32 %v853_v44 }
 0x24b   : > { %v1613_v45 = vpop.eup %1612 }
 0x24c   : > { %v855_v47 = vmul.f32 %v1613_v45, %v847_v35 }
 0x24e   : > { %v863_v49 = vmul.f32 %v1407_v46, %v855_v47 }
 0x250   : > { %v871_v50 = vadd.f32 %v1408_v48, %v863_v49 }
 0x252   : > { %v872_v52 = vpack.c.bf16 %v871_v50, %v871_v50 }
 0x254   : > { %1486 = vmatmul.mubr.msk.bf16.vlgmr.msra.gmra.mxu1 %vm665_vm1, %v872_v52  ;;  %1494 = vmatmul.mubr.msk.bf16.vlgmr.msra.gmra.mxu0 %vm665_vm1, %v872_v52 }
 0x255   : > { %1498 = vmatpush3.bf16.msra.mxu1 %v1608_v51  ;;  %1501 = vmatprep.mubr.msk.bf16.mxu1 %vm1749_vm0, %v1748_v0 }
 0x256   : > { %1499 = vmatprep.subr.bf16.mxu1 %v1748_v0  ;;  %1509 = vmatprep.mubr.msk.bf16.mxu0 %vm1749_vm0, %v1748_v0 }
 0x257   : > { %1506 = vmatpush3.bf16.msra.mxu0 %v1610_v11 }
 0x258   : > { %1507 = vmatprep.subr.bf16.mxu0 %v1748_v0 }
 0x259   : > { %1500 = vmatpush3.bf16.msra.mxu1 %v1609_v53 }
 0x25b   : > { %1508 = vmatpush3.bf16.msra.mxu0 %v1611_v19 }
 0x25c   : > { %1502 = vmatmul.mubr.msk.bf16.vlgmr.msra.gmra.mxu1 %vm665_vm1, %v872_v52 }
 0x314   : > { %v926_v54 = vpop.f32.mrf.mxu1  ;;  %v983_v55 = vpop.f32.mrf.mxu0 }
 0x315   : > { %v1046_v58 = vrot.slane %v926_v54, 7 }
 0x316   : > { %v1487_v56 = vpop.f32.mrf.mxu1  ;;  %v1495_v57 = vpop.f32.mrf.mxu0 }
 0x317   : > { %v1047_v63 = vsel %vm825_vm2, 0.0, %v1046_v58 }
 0x318   : > { %v929_v59 = vpop.f32.mrf.mxu1  ;;  %v986_v60 = vpop.f32.mrf.mxu0  ;;  %v1050_v3 = vadd.f32 %v1047_v63, %v983_v55 }
 0x31a   : > { %v1488_v61 = vpop.f32.mrf.mxu1  ;;  %v1496_v62 = vpop.f32.mrf.mxu0 }
 0x31c   : > { %v1040_v1 = vpop.f32.mrf.mxu1 }
 0x31d   : > { %v1048_v2 = vrot.slane %v1040_v1, 1 }
 0x31e   : > { %v1503_v4 = vpop.f32.mrf.mxu1 }
 0x31f   : > { %v1049_v5 = vsel %vm828_vm3, 0.0, %v1048_v2 }
 0x320   : > { %v1051_v7 = vadd.f32 %v1050_v3, %v1049_v5  ;;  %v1043_v8 = vpop.f32.mrf.mxu1 }
 0x322   : > { %v1504_v9 = vpop.f32.mrf.mxu1  ;;  %v1059_v10 = vadd.f32 %v1426_v6, %v1051_v7 }
 0x324   : > { %v1060_v12 = vmax.f32 %v1059_v10, 0.0 }
 0x326   : > { %v1061_v13 = vsel %vm665_vm1, %v1060_v12, 0.0 }
 0x327   : > { %1062 = vadd.xlane.f32.xlu1 %v1061_v13 }
 0x3b0   : > { %v1063_v14 = vpop.xlane.xlu1 %1062 }
 0x3b1   : > { %v1064_v15 = vmul.f32 0.03125, %v1063_v14 }
 0x3b3   : > { %v1065_v16 = vsub.f32 %v1060_v12, %v1064_v15 }
 0x3b5   : > { %v1066_v17 = vmul.f32 %v1065_v16, %v1065_v16 }
 0x3b7   : > { %v1067_v18 = vsel %vm665_vm1, %v1066_v17, 0.0 }
 0x3b8   : > { %1068 = vadd.xlane.f32.xlu1 %v1067_v18 }
 0x441   : > { %v1069_v20 = vpop.xlane.xlu1 %1068 }
 0x442   : > { %v1070_v21 = vmul.f32 0.03125, %v1069_v20 }
 0x444   : > { %v1071_v22 = vadd.f32 1e-05, %v1070_v21 }
 0x446   : > { %1614 = vrsqrt.f32 %v1071_v22 }
 0x453   : > { %v1615_v23 = vpop.eup %1614 }
 0x454   : > { %v1073_v0 = vmul.f32 %v1615_v23, %v1065_v16 }
 0x456   : > { %v1081_v26 = vmul.f32 %v1427_v24, %v1073_v0 }
 0x458   : > { %v1089_v27 = vadd.f32 %v1428_v25, %v1081_v26 }
 0x45a   : > { %v1090_v28 = vpack.c.bf16 %v1089_v27, %v1089_v27 }
 0x45c   : > { %1510 = vmatmul.mubr.msk.bf16.vlgmr.msra.gmra.mxu0 %vm665_vm1, %v1090_v28 }
 0x51c   : > { %v1151_v32 = vpop.f32.mrf.mxu0 }
 0x51d   : > { %v1152_v33 = vadd.f32 %v1429_v30, %v1151_v32 }
 0x51e   : > { %v1511_v34 = vpop.f32.mrf.mxu0 }
 0x51f   : > { %v1159_v35 = vmul.f32 %v1158_v31, %v1152_v33 }
 0x520   : > { %v1154_v36 = vpop.f32.mrf.mxu0 }
 0x521   : > { %1161 = vst.msk [vmem:[%s645_s23] sm:$0xff] %vm1160_vm4, %v1159_v35 }
 0x522   : > { %v1512_v37 = vpop.f32.mrf.mxu0 }
 0x523 PF: > { %s28_s28 = sadd.s32 1, %s1742_s28   ;;  %s2107_s24 = sld [smem:[#allocation8_spill]] }
 0x524   : > { %p25_p11 = scmp.ge.s32.totalorder %s28_s28, 6   ;;  %s2108_s23 = sld [smem:[#allocation13_spill]] }
 0x525   : > { %s2109_s25 = sld [smem:[#allocation9_spill]]  ;;  %s2113_s21 = smov %s1718_s22 }
 0x526   : > { %s2110_s2 = sld [smem:[#allocation10_spill]] }
 0x527   : > { %s2111_s26 = sld [smem:[#allocation11_spill]] }
 0x528   : > { %s2112_s27 = sld [smem:[#allocation12_spill]]  ;;  %27 = sbr.rel (!%p25_p11) target bundleno = 12 (0xc), region = 155 }
 0x529   : > { %s2114_s22 = smov %s2107_s24 }
 0x52b   : > { %s2115_s24 = smov %s2109_s25 }
 0x52c   : > { %s2116_s25 = smov %s2110_s2 }
 0x52d   :  { %1189 = vsyncpa [#allocation3], 1 }
 0x52e   :  { %1191 = vsyncpa [#allocation3 + $0x1], 1 }
 0x52f   :  { %1192 = vsyncpa [#allocation5], 1 }
 0x530   :  { %1194 = vsyncpa [#allocation5 + $0x1], 1 }

</bundles_post_ra>
